<compile_context>
chip_gen: v7x
topology: tpu7x:2x2x1
jax: 0.10.0
libtpu: 0.0.40
codegen_flags: <defaults>
</compile_context>

<pallas_src>
import jax
import jax.numpy as jnp
from jax import lax
from jax.experimental import pallas as pl
from jax.experimental.pallas import tpu as pltpu

_LANE = 128
_SUBLANE = 8


def _round_up(x, m):
    return (x + m - 1) // m * m


def _linear_kernel(x_ref, w_ref, b_ref, o_ref):
    # x_ref: (TM, K) f32   w_ref: (K, N) f32 (resident across all M-steps)
    # b_ref: (1, N) f32    o_ref: (TM, N) f32
    acc = jnp.dot(
        x_ref[...],
        w_ref[...],
        preferred_element_type=jnp.float32,
        precision=lax.Precision.HIGHEST,  # full f32; kernel is mem-bound so this is free
    )
    o_ref[...] = acc + b_ref[...]


def _pick_tile_m(m):
    """Row-tile along M: >=2 grid steps when possible (v7x megacore), cap 2048."""
    if m <= _SUBLANE:
        return m  # single full-dim tile; nothing to split
    return min(2048, _round_up(pl.cdiv(m, 2), _SUBLANE))


def _vmem_limit_bytes(tm, k, n):
    def tile_bytes(r, c):  # VMEM footprint incl. (8,128) sublane/lane padding, f32
        return _round_up(max(r, 1), _SUBLANE) * _round_up(c, _LANE) * 4

    est = (
        2 * tile_bytes(tm, k)    # double-buffered x tiles
        + 2 * tile_bytes(tm, n)  # double-buffered out tiles
        + 2 * tile_bytes(k, n)   # resident weight (x2 safety margin)
        + 2 * tile_bytes(1, n)   # resident bias
    )
    try:
        cap = int(pltpu.get_tpu_info().vmem_capacity_bytes)
    except Exception:
        cap = 64 << 20  # conservative fallback: v7x per-TC physical VMEM
    cap = (cap * 3) // 4  # ~25% headroom
    return int(min(cap, max(8 << 20, 2 * est)))


def _pallas_linear(x2, w_kn, b_row, *, tm):
    """x2: (M, K) f32; w_kn: (K, N) f32; b_row: (1, N) f32 -> (M, N) f32."""
    M, K = x2.shape
    N = w_kn.shape[1]
    grid_m = pl.cdiv(M, tm)

    flops = 2 * M * K * N
    bytes_accessed = M * K * 4 + K * N * 4 + N * 4 + M * N * 4

    return pl.pallas_call(
        _linear_kernel,
        out_shape=jax.ShapeDtypeStruct((M, N), jnp.float32),
        grid=(grid_m,),
        in_specs=[
            pl.BlockSpec((tm, K), lambda i: (i, 0)),
            pl.BlockSpec((K, N), lambda i: (0, 0)),  # weight resident across M-steps
            pl.BlockSpec((1, N), lambda i: (0, 0)),  # bias resident across M-steps
        ],
        out_specs=pl.BlockSpec((tm, N), lambda i: (i, 0)),
        compiler_params=pltpu.CompilerParams(
            dimension_semantics=("parallel",),  # shard M across TCs on v7x
            vmem_limit_bytes=_vmem_limit_bytes(tm, K, N),
        ),
        cost_estimate=pl.CostEstimate(
            flops=flops, transcendentals=0, bytes_accessed=bytes_accessed
        ),
    )(x2, w_kn, b_row)


@jax.jit
def _linear_forward(x, w_kn, b_row):
    K, N = w_kn.shape
    lead = x.shape[:-1]
    x2 = x.reshape(-1, K)
    tm = _pick_tile_m(x2.shape[0])
    out = _pallas_linear(x2, w_kn, b_row, tm=tm)
    return out.reshape(*lead, N)


class InnerLinear:
    """Stand-in for the wrapped nn.Linear; forward runs the Pallas kernel."""

    def __init__(self, in_features, out_features, key):
        kw, kb = jax.random.split(key)
        bound = 1.0 / float(in_features) ** 0.5
        # PyTorch nn.Linear parameter shapes: weight (out, in), bias (out,)
        self.weight = jax.random.uniform(
            kw, (out_features, in_features), jnp.float32, -bound, bound
        )
        self.bias = jax.random.uniform(kb, (out_features,), jnp.float32, -bound, bound)
        self.in_features = in_features
        self.out_features = out_features

        # Kernel-ready cached params, built ONCE at init (no per-call transpose):
        # weight in (K, N) layout for a plain lhs-dim1 x rhs-dim0 MXU dot.
        self._w_kn = jnp.asarray(self.weight.T)          # (K, N) f32
        self._b_row = self.bias.reshape(1, out_features)  # (1, N) f32

    def forward(self, x):
        return _linear_forward(x, self._w_kn, self._b_row)


class ColossalaiModule:
    """Faithful port of the delegation semantics of the PyTorch ColossalaiModule."""

    def __init__(self, module, **kwargs):
        # copy the wrapped module's attribute dict
        self.__dict__.update(module.__dict__.copy())
        # expose the wrapped module's callable methods (except __init__/forward)
        for name in dir(module.__class__):
            attr = getattr(module.__class__, name)
            if (
                name not in ("__init__", "forward")
                and callable(attr)
                and not name.startswith("__")
            ):
                setattr(self, name, getattr(module, name))
        self._forward_func = module.forward
        for k, v in kwargs.items():
            setattr(self, k, v)

    def forward(self, *args):
        return self._forward_func(*args)

    def __call__(self, *args):
        return self.forward(*args)


if __name__ == "__main__":
    key = jax.random.PRNGKey(0)
    k_in, k_mod, k_big = jax.random.split(key, 3)

    batch, seq, hidden, out_dim = 2, 8, 32, 64
    x = jax.random.normal(k_in, (batch, seq, hidden), jnp.float32)

    inner = InnerLinear(hidden, out_dim, k_mod)
    module = ColossalaiModule(inner)

    y = module(x)
    y = jax.block_until_ready(y)
    assert y.shape == (batch, seq, out_dim), y.shape

    # Full-f32 reference of the wrapped nn.Linear forward.
    ref = (
        jnp.dot(x, inner.weight.T, precision=lax.Precision.HIGHEST) + inner.bias
    )
    assert jnp.allclose(y, ref, atol=1e-4, rtol=1e-4), float(jnp.max(jnp.abs(y - ref)))

    # Secondary check: larger ragged M exercises the multi-step grid + masked tail.
    x_big = jax.random.normal(k_big, (2500, hidden), jnp.float32)
    y_big = jax.block_until_ready(module(x_big))
    ref_big = (
        jnp.dot(x_big, inner.weight.T, precision=lax.Precision.HIGHEST) + inner.bias
    )
    assert y_big.shape == (2500, out_dim), y_big.shape
    assert jnp.allclose(y_big, ref_big, atol=1e-4, rtol=1e-4), float(
        jnp.max(jnp.abs(y_big - ref_big))
    )

    print("KERNEL_OK")
</pallas_src>

<mosaic_0001>
module attributes {stable_mosaic.version = 11 : i64} {
  func.func @_linear_kernel(%arg0: i32, %arg1: memref<8x32xf32, #tpu.memory_space<vmem>>, %arg2: memref<32x64xf32, #tpu.memory_space<vmem>>, %arg3: memref<1x64xf32, #tpu.memory_space<vmem>>, %arg4: memref<8x64xf32, #tpu.memory_space<vmem>>) attributes {dimension_semantics = [#tpu.dimension_semantics<parallel>], iteration_bounds = array<i64: 2>, scalar_prefetch = 0 : i64, scratch_operands = 0 : i64, tpu.core_type = #tpu.core_type<tc>, window_params = [{transform_indices = @transform_0, window_bounds = array<i64: 8, 32>}, {pipeline_mode = #tpu.pipeline_mode<synchronous>, transform_indices = @transform_1, window_bounds = array<i64: 32, 64>}, {pipeline_mode = #tpu.pipeline_mode<synchronous>, transform_indices = @transform_2, window_bounds = array<i64: 1, 64>}, {transform_indices = @transform_3, window_bounds = array<i64: 8, 64>}]} {
    %c0 = arith.constant 0 : index
    %c0_0 = arith.constant 0 : index
    %0 = vector.load %arg1[%c0, %c0_0] : memref<8x32xf32, #tpu.memory_space<vmem>>, vector<8x32xf32>
    %c0_1 = arith.constant 0 : index
    %c0_2 = arith.constant 0 : index
    %1 = vector.load %arg2[%c0_1, %c0_2] : memref<32x64xf32, #tpu.memory_space<vmem>>, vector<32x64xf32>
    %cst = arith.constant dense<0.000000e+00> : vector<8x64xf32>
    %2 = tpu.matmul %0, %1, %cst {dimension_numbers = #tpu.dot_dimension_numbers<[1], [0], [0], [1], [0, 0, 1, 1], [], []>, precision = #tpu.contract_precision<fp32>} : vector<8x32xf32>, vector<32x64xf32>, vector<8x64xf32> -> vector<8x64xf32>
    %c0_3 = arith.constant 0 : index
    %c0_4 = arith.constant 0 : index
    %3 = vector.load %arg3[%c0_3, %c0_4] : memref<1x64xf32, #tpu.memory_space<vmem>>, vector<1x64xf32>
    %4 = vector.broadcast %3 : vector<1x64xf32> to vector<8x64xf32>
    %5 = arith.addf %2, %4 : vector<8x64xf32>
    %c0_5 = arith.constant 0 : index
    %c0_6 = arith.constant 0 : index
    %6 = vector.load %arg4[%c0_5, %c0_6] : memref<8x64xf32, #tpu.memory_space<vmem>>, vector<8x64xf32>
    tpu.vector_store %arg4[%c0_5, %c0_6], %5 {strides = array<i32>} : memref<8x64xf32, #tpu.memory_space<vmem>>, vector<8x64xf32>,
    return
  }
  func.func @transform_0(%arg0: i32) -> (i32, i32) {
    %c0_i32 = arith.constant 0 : i32
    %c0_i32_0 = arith.constant 0 : i32
    return %arg0, %c0_i32 : i32, i32
  }
  func.func @transform_1(%arg0: i32) -> (i32, i32) {
    %c0_i32 = arith.constant 0 : i32
    %c0_i32_0 = arith.constant 0 : i32
    %c0_i32_1 = arith.constant 0 : i32
    return %c0_i32, %c0_i32_0 : i32, i32
  }
  func.func @transform_2(%arg0: i32) -> (i32, i32) {
    %c0_i32 = arith.constant 0 : i32
    %c0_i32_0 = arith.constant 0 : i32
    %c0_i32_1 = arith.constant 0 : i32
    return %c0_i32, %c0_i32_0 : i32, i32
  }
  func.func @transform_3(%arg0: i32) -> (i32, i32) {
    %c0_i32 = arith.constant 0 : i32
    %c0_i32_0 = arith.constant 0 : i32
    return %arg0, %c0_i32 : i32, i32
  }
}

</mosaic_0001>

<bundles_post_ra>
// kernel: _linear_forward.1
= control target key start
LH: loop header
LB: loop body
LE: loop exit
PB: predicated region body
PF: predicated region fallthrough
CT: control target
= control target key end

     0   :  { %8 = vsyncpa [#allocation3], 0  ;;  %s1402_s0 = inlined_call_operand.hbm [shape: f32[16,32], index: 0, kind: input, shape index: {}]   ;;  %s1403_s1 = inlined_call_operand.hbm [shape: f32[32,64], index: 1, kind: input, shape index: {}]   ;;  %s1404_s2 = inlined_call_operand.vmem [shape: f32[1,64], index: 2, kind: input, shape index: {}]   ;;  %s1405_s3 = inlined_call_operand.hbm [shape: f32[16,64], index: 3, kind: output, shape index: {}]  }
   0x1   :  { %10 = vsyncpa [#allocation3 + $0x1], 0 }
   0x2   :  { %11 = vsyncpa [#allocation6], 0 }
   0x3   :  { %12 = vsyncpa [#allocation4], 0 }
   0x4   :  { %14 = vsyncpa [#allocation4 + $0x1], 0  ;;  %s1175_s12 = smov 0   ;;  %s1177_s13 = smov 0  }
   0x5   :  { %s1179_s14 = smov 0   ;;  %s1181_s15 = smov 0  }
   0x6 LB: > { %s1196_s16 = sadd.s32 4294967295, %s1145_s15   ;;  %s798_s17 = sadd.s32 4294967294, %s1145_s15   ;;  %s1145_s15 = sphi %s1181_s15, %s1425_s15   ;;  %s1141_s14 = sphi %s1179_s14, %s1424_s14   ;;  %s1137_s13 = sphi %s1177_s13, %s1423_s13   ;;  %s1133_s12 = sphi %s1175_s12, %s1422_s12  }
   0x7   : > { %p40_p0 = scmp.ne.s32.totalorder %s1137_s13, %s1133_s12  ;;  %p1406_p1 = scmp.eq.s32.totalorder %s1196_s16, 0 }
   0x8   : > { %p112_p3 = scmp.eq.s32.totalorder %s798_s17, 1  ;;  %p799_p5 = scmp.ge.s32.totalorder %s1145_s15, 1 }
   0x9   : > { %p1205_p4 = por %p1406_p1, %p40_p0  ;;  %p119_p7 = scmp.lt.s32.totalorder %s1145_s15, 3 }
   0xa   : > { %p1210_p6 = por %p112_p3, %p40_p0  ;;  %s1147_s21 = smov [#allocation5]  }
   0xb   : > { %s1409_s18 = scalar_select %p1205_p4, 1, 0 }
   0xc   : > { %s1410_s19 = scalar_select %p1210_p6, 1, 0 }
   0xd   : > { %p1215_p8 = pnand %p799_p5, %p119_p7  ;;  %s131_s22 = sshll.u32 %s1147_s21, 4  ;;  %s1219_s22 = int_to_ptr.vmem [resolvable:$true] %s131_s22 }
   0xe   : > { %s1231_s24 = sadd.s32 1, %s1145_s15   ;;  %s27_s25 = sadd.s32 1, %s1141_s14 }
   0xf   : > { %s1411_s20 = scalar_select %p1215_p8, 1, 0 }
  0x10   : > { %p963_p9 = pneg %p1215_p8  ;;  %s24_s26 = ssub.s32 %s1145_s15, %s1231_s24 }
  0x11   : > { %s1017_s29 = scalar_lea.hbm %s1403_s1, 512 }
  0x12   : > { %p1226_p11 = pnand %p963_p9, %p1406_p1  ;;  %p1018_p12 = scmp.ne.s32.totalorder %s1403_s1, %s1017_s29 }
  0x13   : > { %p1024_p5 = scmp.lt.u32.totalorder %s1017_s29, %s1403_s1 }
  0x14   : > { %p1019_p13 = pneg %p1226_p11 }
  0x16   : > { %p1020_p0 = pnand %p1019_p13, %p1018_p12 }
  0x18   : > { %p1021_p3 = pneg %p1020_p0 }
  0x1a   : > { %p1026_p7 = pnand %p1024_p5, %p1021_p3 }
  0x1c   : > { %1029 = shalt.err (!%p1026_p7)
}
  0x1d   : > { %s1030_s7 = scalar_lea.vmem %s1219_s22, 512  ;;  %p1038_p2 = scmp.lt.s32.totalorder %s1219_s22, %s1219_s22 }
  0x1e   : > { %p1031_p9 = scmp.ne.s32.totalorder %s1219_s22, %s1030_s7  ;;  %p1039_p6 = scmp.lt.s32.totalorder %s1030_s7, %s1030_s7 }
  0x20   : > { %p1033_p10 = pnand %p1031_p9, %p1019_p13  ;;  %p1040_p4 = por %p1039_p6, %p1038_p2 }
  0x22   : > { %p1034_p1 = pneg %p1033_p10 }
  0x24   : > { %p1041_p8 = pnand %p1040_p4, %p1034_p1 }
  0x26   : > { %1044 = shalt.err (!%p1041_p8)
}
  0x27   : > { %s1148_s8 = smov 128   ;;  %s1149_s9 = smov 8  }
  0x28   : > { %966 = dma.hbm_to_vmem [thread:$0]  (!%p1226_p11), %s1403_s1, 512, %s1219_s22, [#allocation6], %s1148_s8, %s1148_s8, %s1149_s9  }
  0x29   : > { %p25_p2 = scmp.eq.s32.totalorder %s24_s26, 0  ;;  %p34_p1 = scmp.ne.s32.totalorder %s1141_s14, %s1137_s13 }
  0x2a   : > { %p35_p4 = scmp.eq.s32.totalorder %s1145_s15, 0  ;;  %p976_p6 = scmp.lt.s32.totalorder %s1145_s15, 2 }
  0x2b   : > { %s1262_s17 = scalar_select %p25_p2, %s1141_s14, %s27_s25  }
  0x2c   : > { %p36_p8 = por %p35_p4, %p34_p1  ;;  %p1413_p10 = scmp.eq.s32.totalorder %s1196_s16, 1 }
  0x2d   : > { %s148_s27 = sand.u32 1, %s1141_s14   ;;  %s803_s28 = sshll.u32 %s1145_s15, 7 }
  0x2e   : > { %p1266_p12 = por %p1413_p10, %p34_p1  ;;  %s802_s29 = sshll.u32 %s148_s27, 3 }
  0x2f   : > { %s1275_s4 = scalar_lea.hbm %s1402_s0, %s803_s28  ;;  %s152_s22 = scalar_lea.vmem [#allocation2], %s802_s29 }
  0x30   : > { %s159_s25 = sshll.u32 %s152_s22, 4  ;;  %p1277_p11 = pnand %p976_p6, %p36_p8  ;;  %s1281_s25 = int_to_ptr.vmem [resolvable:$true] %s159_s25 }
  0x31   : > { %s149_s5 = scalar_lea.sflag [#allocation3], %s148_s27  ;;  %s1045_s6 = scalar_lea.hbm %s1275_s4, 128 }
  0x32   : > { %p1046_p13 = scmp.ne.s32.totalorder %s1275_s4, %s1045_s6  ;;  %p1047_p0 = pneg %p1277_p11 }
  0x33   : > { %s1050_s9 = scalar_lea.hbm %s1402_s0, 256  ;;  %p1051_p7 = scmp.lt.u32.totalorder %s1275_s4, %s1402_s0 }
  0x34   : > { %p1048_p3 = pnand %p1047_p0, %p1046_p13  ;;  %p1052_p9 = scmp.lt.u32.totalorder %s1050_s9, %s1045_s6 }
  0x35   : > { %p1054_p1 = scmp.lt.u32.totalorder %s1045_s6, %s1275_s4 }
  0x36   : > { %p1049_p5 = pneg %p1048_p3  ;;  %p1053_p2 = por %p1052_p9, %p1051_p7 }
  0x38   : > { %p1055_p4 = por %p1054_p1, %p1053_p2 }
  0x3a   : > { %p1056_p6 = pnand %p1055_p4, %p1049_p5 }
  0x3c   : > { %1059 = shalt.err (!%p1056_p6)
}
  0x3d   : > { %s1060_s27 = scalar_lea.vmem %s1281_s25, 128  ;;  %s1150_s28 = smov [#allocation2]  }
  0x3e   : > { %p1061_p8 = scmp.ne.s32.totalorder %s1281_s25, %s1060_s27  ;;  %s1065_s29 = sshll.u32 %s1150_s28, 4  ;;  %s1066_s29 = int_to_ptr.vmem [resolvable:$false] %s1065_s29 }
  0x3f   : > { %s1067_s23 = scalar_lea.vmem %s1066_s29, 256  ;;  %p1068_p3 = scmp.lt.s32.totalorder %s1281_s25, %s1066_s29 }
  0x40   : > { %p1063_p10 = pnand %p1061_p8, %p1047_p0  ;;  %p1069_p7 = scmp.lt.s32.totalorder %s1067_s23, %s1060_s27 }
  0x42   : > { %p1064_p13 = pneg %p1063_p10  ;;  %p1070_p9 = por %p1069_p7, %p1068_p3 }
  0x44   : > { %p1071_p2 = pnand %p1070_p9, %p1064_p13 }
  0x46   : > { %1074 = shalt.err (!%p1071_p2)
}
  0x47   : > { %970 = dma.hbm_to_vmem [thread:$0]  (!%p1277_p11), %s1275_s4, 128, %s1281_s25, %s149_s5  }
  0x48   : > { %p1416_p5 = scmp.ne.s32.totalorder %s1411_s20, 0 }
  0x49   : > { %s1311_s30 = sand.u32 (!%p1416_p5), 1, %s1137_s13   ;;  %p1417_p0 = scmp.ne.s32.totalorder (!%p1416_p5), %s1409_s18, 0 }
  0x4a   : > { %168 = sbr.rel (%p1416_p5) target bundleno = 345 (0x159), region = 32  ;;  %s805_s22 = sshll.u32 (!%p1416_p5), %s1311_s30, 3 }
  0x4b   : > { %s171_s6 = scalar_lea.sflag (!%p1416_p5), [#allocation3], %s1311_s30  ;;  %s174_s7 = scalar_lea.vmem (!%p1416_p5), [#allocation2], %s805_s22 }
  0x51   : > { %1120 = dma.done.wait (%p1417_p0), %s171_s6, 128  }
  0x52   : > { %1122 = vsyncadd (%p1417_p0), %s171_s6, 4294967168  ;;  %p1418_p11 = scmp.eq.s32.totalorder %s1196_s16, 0 }
  0x54   : > { %1124 = dma.done.wait (%p1418_p11), [#allocation6], 512   ;;  %p1419_p1 = pmov %p1418_p11 }
  0x55   : > { %v1151_v0 = vmov 0.0|0.0   ;;  %vm1152_vm0 = vmmov 0   ;;  %v1153_v1 = vmov 0.0   ;;  %vm213_vm1 = vcmask 261120   ;;  %v202_v2 = vld [vmem:[#allocation5] sm:$0xff]  ;;  %v203_v3 = vld [vmem:[#allocation5 + $0x8] sm:$0xff] }
  0x56   : > { %1126 = vsyncadd (%p1419_p1), [#allocation6], 4294966784  ;;  %909 = vmatprep.subr.bf16.mxu1 %v1151_v0  ;;  %927 = vmatprep.subr.bf16.mxu0 %v1151_v0  ;;  %v204_v4 = vld [vmem:[#allocation5 + $0x10] sm:$0xff]  ;;  %v218_v5 = vand.u32 4294901760, %v202_v2  ;;  %v221_v6 = vand.u32 4294901760, %v203_v3  ;;  %v205_v7 = vld [vmem:[#allocation5 + $0x18] sm:$0xff] }
  0x57   : > { %851 = vmatprep.mubr.msk.f32.mxu1 %vm1152_vm0, %v1153_v1  ;;  %884 = vmatprep.mubr.msk.f32.mxu0 %vm1152_vm0, %v1153_v1  ;;  %v224_v8 = vand.u32 4294901760, %v204_v4  ;;  %v201_v9 = vld [vmem:[%s174_s7] sm:$0xff]  ;;  %v227_v10 = vand.u32 4294901760, %v205_v7  ;;  %s810_s4 = sshll.u32 %s1196_s16, 7  ;;  %s200_s25 = scalar_lea.vmem [#allocation7], %s805_s22  ;;  %vm702_vm2 = vcmask 523264  }
  0x58   : > { %v215_v11 = vsel %vm213_vm1, %v201_v9, 0  ;;  %v910_v12 = vpack.c.bf16 %v221_v6, %v218_v5  ;;  %v298_v13 = vsub.f32 %v202_v2, %v218_v5  ;;  %v305_v14 = vsub.f32 %v203_v3, %v221_v6  ;;  %v808_v41 = vld [vmem:[%s1404_s2] ss:$0 sm:$0xff]  ;;  %s718_s26 = sshll.u32 %s200_s25, 4  ;;  %s1358_s9 = scalar_lea.hbm %s1405_s3, %s810_s4  ;;  %s1360_s26 = int_to_ptr.vmem [resolvable:$true] %s718_s26 }
  0x59   : > { %v312_v15 = vsub.f32 %v204_v4, %v224_v8  ;;  %v319_v16 = vsub.f32 %v205_v7, %v227_v10  ;;  %v286_v17 = vand.u32 4294901760, %v215_v11  ;;  %v913_v18 = vpack.c.bf16 %v227_v10, %v224_v8  ;;  %s705_s10 = scalar_lea.sflag [#allocation4], %s1311_s30  ;;  %s1075_s16 = scalar_lea.vmem %s1360_s26, 128 }
  0x5a   : > { %911 = vmatpush3.bf16.msra.mxu1 %v910_v12  ;;  %929 = vmatpush3.bf16.msra.mxu0 %v910_v12  ;;  %v299_v19 = vand.u32 4294901760, %v298_v13  ;;  %v306_v20 = vand.u32 4294901760, %v305_v14  ;;  %v922_v39 = vpack.c.bf16 %v305_v14, %v298_v13  ;;  %p1076_p4 = scmp.ne.s32.totalorder %s1360_s26, %s1075_s16  ;;  %s1154_s11 = smov [#allocation7]  }
  0x5b   : > { %v313_v21 = vand.u32 4294901760, %v312_v15  ;;  %912 = vmatprep.subr.bf16.mxu1 %v1151_v0  ;;  %930 = vmatprep.subr.bf16.mxu0 %v1151_v0  ;;  %v287_v22 = vsub.f32 %v215_v11, %v286_v17  ;;  %v320_v23 = vand.u32 4294901760, %v319_v16  ;;  %v925_v40 = vpack.c.bf16 %v319_v16, %v312_v15  ;;  %s1079_s27 = sshll.u32 %s1154_s11, 4  ;;  %s1080_s27 = int_to_ptr.vmem [resolvable:$false] %s1079_s27 }
  0x5c   : > { %v300_v24 = vsub.f32 %v298_v13, %v299_v19  ;;  %v307_v25 = vsub.f32 %v305_v14, %v306_v20  ;;  %v934_v31 = vpack.c.bf16 %v306_v20, %v299_v19  ;;  %p1077_p6 = pnand %p1076_p4, %p1266_p12  ;;  %s1081_s28 = scalar_lea.vmem %s1080_s27, 256 }
  0x5d   : > { %v314_v26 = vsub.f32 %v312_v15, %v313_v21  ;;  %v288_v27 = vand.u32 4294901760, %v287_v22  ;;  %v321_v28 = vsub.f32 %v319_v16, %v320_v23  ;;  %v937_v37 = vpack.c.bf16 %v320_v23, %v313_v21  ;;  %p1082_p10 = scmp.lt.s32.totalorder %s1360_s26, %s1080_s27  ;;  %p1083_p13 = scmp.lt.s32.totalorder %s1081_s28, %s1075_s16 }
  0x5e   : > { %914 = vmatpush3.bf16.msra.mxu1 %v913_v18  ;;  %932 = vmatpush3.bf16.msra.mxu0 %v913_v18  ;;  %v301_v29 = vand.u32 4294901760, %v300_v24  ;;  %v308_v30 = vand.u32 4294901760, %v307_v25  ;;  %p1078_p8 = pneg %p1077_p6 }
  0x5f   : > { %v289_v32 = vsub.f32 %v287_v22, %v288_v27  ;;  %915 = vmatprep.subr.bf16.mxu1 %v1151_v0  ;;  %933 = vmatprep.subr.bf16.mxu0 %v1151_v0  ;;  %v315_v34 = vand.u32 4294901760, %v314_v26  ;;  %v322_v35 = vand.u32 4294901760, %v321_v28  ;;  %p1084_p3 = por %p1083_p13, %p1082_p10 }
  0x60   : > { %v916_v33 = vpack.c.bf16 %v308_v30, %v301_v29 }
  0x61   : > { %v290_v36 = vand.u32 4294901760, %v289_v32  ;;  %885 = vmatmul.mubr.f32.vlgmr.msra.gmra.mrb[0].mxu0 %v288_v27  ;;  %v919_v38 = vpack.c.bf16 %v322_v35, %v315_v34  ;;  %p1085_p7 = pnand %p1084_p3, %p1078_p8 }
  0x62   : > { %935 = vmatpush3.bf16.msra.mxu0 %v934_v31  ;;  %895 = vmatprep.mubr.msk.f32.mxu0 %vm1152_vm0, %v1153_v1 }
  0x63   : > { %852 = vmatmul.mubr.f32.vlgmr.msra.gmra.mrb[0].mxu1 %v290_v36  ;;  %936 = vmatprep.subr.bf16.mxu0 %v1151_v0 }
  0x64   : > { %917 = vmatpush3.bf16.msra.mxu1 %v916_v33  ;;  %862 = vmatprep.mubr.msk.f32.mxu1 %vm1152_vm0, %v1153_v1 }
  0x65   : > { %918 = vmatprep.subr.bf16.mxu1 %v1151_v0 }
  0x66   : > { %938 = vmatpush3.bf16.msra.mxu0 %v937_v37 }
  0x67   : > { %939 = vmatprep.subr.bf16.mxu0 %v1151_v0 }
  0x68   : > { %920 = vmatpush3.bf16.msra.mxu1 %v919_v38 }
  0x69   : > { %921 = vmatprep.subr.bf16.mxu1 %v1151_v0  ;;  %896 = vmatmul.mubr.f32.vlgmr.msra.gmra.mrb[0].mxu0 %v286_v17 }
  0x6a   : > { %941 = vmatpush3.bf16.msra.mxu0 %v910_v12  ;;  %906 = vmatprep.mubr.msk.f32.mxu0 %vm1152_vm0, %v1153_v1 }
  0x6b   : > { %863 = vmatmul.mubr.f32.vlgmr.msra.gmra.mrb[0].mxu1 %v286_v17  ;;  %942 = vmatprep.subr.bf16.mxu0 %v1151_v0 }
  0x6c   : > { %923 = vmatpush3.bf16.msra.mxu1 %v922_v39  ;;  %873 = vmatprep.mubr.msk.f32.mxu1 %vm1152_vm0, %v1153_v1 }
  0x6d   : > { %924 = vmatprep.subr.bf16.mxu1 %v1151_v0 }
  0x6e   : > { %944 = vmatpush3.bf16.msra.mxu0 %v913_v18 }
  0x70   : > { %926 = vmatpush3.bf16.msra.mxu1 %v925_v40 }
  0x71   : > { %907 = vmatmul.mubr.f32.vlgmr.msra.gmra.mrb[0].mxu0 %v286_v17 }
  0x73   : > { %874 = vmatmul.mubr.f32.vlgmr.msra.gmra.mrb[0].mxu1 %v287_v22 }
 0x144   : > { %v698_v42 = vpop.f32.mrb[0].mxu0 }
 0x145   : > { %v908_v43 = vpop.f32.mrb[1].mxu0 }
 0x146   : > { %v463_v44 = vpop.f32.mrb[0].mxu1 }
 0x147   : > { %v945_v45 = vadd.f32 %v808_v41, %v463_v44  ;;  %v875_v46 = vpop.f32.mrb[1].mxu1 }
 0x149   : > { %v946_v47 = vadd.f32 %v945_v45, %v698_v42 }
 0x14b   : > { %703 = vst.msk [vmem:[%s200_s25] sm:$0xff] %vm702_vm2, %v946_v47 }
 0x14c   : > { %1088 = shalt.err (!%p1085_p7)
}
 0x14d   : > { %s1089_s29 = scalar_lea.hbm %s1358_s9, 128  ;;  %s1093_s22 = scalar_lea.hbm %s1405_s3, 256 }
 0x14e   : > { %p1090_p9 = scmp.ne.s32.totalorder %s1358_s9, %s1089_s29  ;;  %p1094_p0 = scmp.lt.u32.totalorder %s1358_s9, %s1405_s3 }
 0x14f   : > { %p1095_p11 = scmp.lt.u32.totalorder %s1093_s22, %s1089_s29  ;;  %p1097_p4 = scmp.lt.u32.totalorder %s1089_s29, %s1358_s9 }
 0x150   : > { %p1091_p2 = pnand %p1090_p9, %p1266_p12 }
 0x151   : > { %p1096_p1 = por %p1095_p11, %p1094_p0 }
 0x152   : > { %p1092_p5 = pneg %p1091_p2 }
 0x153   : > { %p1098_p6 = por %p1097_p4, %p1096_p1 }
 0x155   : > { %p1099_p8 = pnand %p1098_p6, %p1092_p5 }
 0x157   : > { %1102 = shalt.err (!%p1099_p8)
}
 0x158   : > { %961 = dma.vmem_to_hbm [thread:$0]  (%p1266_p12), %s1360_s26, 128, %s1358_s9, %s705_s10  }
 0x159 PF: > { %s730_s18 = sand.u32 1, %s1133_s12   ;;  %p1420_p10 = scmp.ne.s32.totalorder %s1410_s19, 0 }
 0x15a   : > { %p1421_p13 = scmp.ge.s32.totalorder %s1145_s15, 2  ;;  %s731_s20 = scalar_lea.sflag [#allocation4], %s730_s18 }
 0x15c   : > { %p972_p3 = pnand %p1421_p13, %p1420_p10 }
 0x15e   : > { %1128 = dma.done.wait (!%p972_p3), %s731_s20, 128  }
 0x15f   : > { %1130 = vsyncadd (!%p972_p3), %s731_s20, 4294967168  ;;  %p17_p7 = scmp.ge.s32.totalorder %s1231_s24, 4   ;;  %s1422_s12 = smov %s1137_s13 }
 0x160   : > { %s1423_s13 = smov %s1141_s14  ;;  %s1424_s14 = smov %s1262_s17 }
 0x161   : > { %s1425_s15 = smov %s1231_s24  ;;  %19 = sbr.rel (!%p17_p7) target bundleno = 6 (0x6), region = 81 }
 0x168   :  { %736 = vsyncpa [#allocation3], 1 }
 0x169   :  { %738 = vsyncpa [#allocation3 + $0x1], 1 }
 0x16a   :  { %739 = vsyncpa [#allocation6], 1 }
 0x16b   :  { %740 = vsyncpa [#allocation4], 1 }
 0x16c   :  { %742 = vsyncpa [#allocation4 + $0x1], 1 }

</bundles_post_ra>
